<compile_context>
chip_gen: v7x
topology: tpu7x:2x2x1
jax: 0.10.0
libtpu: 0.0.40
codegen_flags: <defaults>
</compile_context>

<pallas_src>
import jax
import jax.numpy as jnp
from jax.experimental import pallas as pl
from jax.experimental.pallas import tpu as pltpu

EPS = 1e-5  # PyTorch BatchNorm1d default eps
_LANES = 128


def _fused_mlp_kernel(x_ref, w1_ref, t1_ref, w2_ref, t2_ref, w3_ref, t3_ref,
                      out_ref):
    x = x_ref[...]          # (4, T) float32, batch on lanes
    w1 = w1_ref[...]        # (128, 4)

    # Layer 1: Linear(4 -> 128) [+ folded BN] + ReLU.
    # K=4 contraction as 4 broadcast FMAs on the VPU (outer products),
    # keeping the MXU extended-issue slot free.
    h = w1[:, 0:1] * x[0:1, :]
    h = h + w1[:, 1:2] * x[1:2, :]
    h = h + w1[:, 2:3] * x[2:3, :]
    h = h + w1[:, 3:4] * x[3:4, :]
    h = jnp.maximum(h + t1_ref[...], 0.0)                     # (128, T)

    # Layer 2: Linear(128 -> 16) [+ folded BN] + ReLU on the MXU.
    h = jnp.dot(w2_ref[...], h, preferred_element_type=jnp.float32)
    h = jnp.maximum(h + t2_ref[...], 0.0)                     # (16, T)

    # Layer 3: Linear(16 -> 16) [+ folded BN] + ReLU on the MXU.
    h = jnp.dot(w3_ref[...], h, preferred_element_type=jnp.float32)
    h = jnp.maximum(h + t3_ref[...], 0.0)                     # (16, T)

    out_ref[...] = h.astype(out_ref.dtype)                    # lane-dense store


def landmark_model_forward(x, fused, max_tile_n=4096):
    """x: (N, 4) float32.  fused: dict with BN-folded weights/shifts.

    Returns (N, 16) float32, matching the PyTorch module interface.
    """
    n = x.shape[0]
    # Pad the batch to a lane multiple and pick a tile that divides it.
    n_pad = pl.cdiv(n, _LANES) * _LANES
    tile_n = min(max_tile_n, n_pad)          # both are multiples of 128
    n_pad = pl.cdiv(n_pad, tile_n) * tile_n

    x_t = x.astype(jnp.float32).T            # (4, N): batch on the lane axis
    if n_pad != n:
        x_t = jnp.pad(x_t, ((0, 0), (0, n_pad - n)))

    const = lambda i: (0, 0)                 # params: resident across steps
    out_t = pl.pallas_call(
        _fused_mlp_kernel,
        out_shape=jax.ShapeDtypeStruct((16, n_pad), jnp.float32),
        grid=(n_pad // tile_n,),
        in_specs=[
            pl.BlockSpec((4, tile_n), lambda i: (0, i)),   # x tile
            pl.BlockSpec((128, 4), const),                 # W1'
            pl.BlockSpec((128, 1), const),                 # t1'
            pl.BlockSpec((16, 128), const),                # W2'
            pl.BlockSpec((16, 1), const),                  # t2'
            pl.BlockSpec((16, 16), const),                 # W3'
            pl.BlockSpec((16, 1), const),                  # t3'
        ],
        out_specs=pl.BlockSpec((16, tile_n), lambda i: (0, i)),
        compiler_params=pltpu.CompilerParams(
            dimension_semantics=("parallel",)),
    )(x_t, fused["w1"], fused["t1"], fused["w2"], fused["t2"],
      fused["w3"], fused["t3"])

    return out_t[:, :n].T                    # back to (N, 16)


def init_params(key):
    """Deterministic synthetic parameters matching the nn.Module shapes.

    Returns (raw, fused): raw PyTorch-style Linear/BN params for the reference,
    and BN-folded (W', t') params in feature-major layout for the kernel.
    """
    dims = [(4, 128), (128, 16), (16, 16)]
    ks = jax.random.split(key, len(dims))
    raw, fused = {}, {}
    for i, ((din, dout), k) in enumerate(zip(dims, ks), start=1):
        kw, kb, kg, kbeta, km, kv = jax.random.split(k, 6)
        w = jax.random.normal(kw, (dout, din), jnp.float32) * 0.1  # (out, in)
        b = jax.random.normal(kb, (dout,), jnp.float32) * 0.1
        gamma = 1.0 + 0.1 * jax.random.normal(kg, (dout,), jnp.float32)
        beta = 0.1 * jax.random.normal(kbeta, (dout,), jnp.float32)
        run_mean = 0.05 * jax.random.normal(km, (dout,), jnp.float32)
        run_var = jax.random.uniform(kv, (dout,), jnp.float32,
                                     minval=0.5, maxval=1.5)
        raw[f"w{i}"], raw[f"b{i}"] = w, b
        raw[f"gamma{i}"], raw[f"beta{i}"] = gamma, beta
        raw[f"mean{i}"], raw[f"var{i}"] = run_mean, run_var

        # Fold BN (eval mode) into the Linear: y = (Wx+b - mean)*s + beta
        #   = (s[:,None]*W) x + ((b - mean)*s + beta)
        scale = gamma / jnp.sqrt(run_var + EPS)
        fused[f"w{i}"] = (w * scale[:, None]).astype(jnp.float32)   # (out, in)
        fused[f"t{i}"] = ((b - run_mean) * scale + beta).reshape(dout, 1)
    return raw, fused


def reference_forward(x, raw):
    """Pure-JAX reference: Linear -> BatchNorm1d(eval) -> ReLU, three times."""
    h = x
    for i in range(1, 4):
        h = jnp.dot(h, raw[f"w{i}"].T,
                    precision=jax.lax.Precision.HIGHEST) + raw[f"b{i}"]
        scale = raw[f"gamma{i}"] / jnp.sqrt(raw[f"var{i}"] + EPS)
        h = (h - raw[f"mean{i}"]) * scale + raw[f"beta{i}"]
        h = jnp.maximum(h, 0.0)
    return h


if __name__ == "__main__":
    key = jax.random.PRNGKey(0)
    kx, kp = jax.random.split(key)

    n = 1000                                  # non-multiple of 128: exercises
    x = jax.random.normal(kx, (n, 4), jnp.float32)  # padding + multi-tile grid
    raw, fused = init_params(kp)

    # Small tile so the batch grid actually has several steps in this test.
    out = landmark_model_forward(x, fused, max_tile_n=256)
    out = jax.block_until_ready(out)

    ref = reference_forward(x, raw)
    assert out.shape == (n, 16), f"bad shape {out.shape}"
    # Tolerance accommodates MXU f32 multi-pass rounding; structural bugs would
    # produce errors orders of magnitude larger.
    assert jnp.allclose(out, ref, atol=2e-3, rtol=2e-3), (
        f"mismatch vs JAX reference, max abs err "
        f"{float(jnp.max(jnp.abs(out - ref)))}")
    print("KERNEL_OK")
</pallas_src>

<mosaic_0001>
module attributes {stable_mosaic.version = 11 : i64} {
  func.func @_fused_mlp_kernel(%arg0: i32, %arg1: memref<4x256xf32, #tpu.memory_space<vmem>>, %arg2: memref<128x4xf32, #tpu.memory_space<vmem>>, %arg3: memref<128x1xf32, #tpu.memory_space<vmem>>, %arg4: memref<16x128xf32, #tpu.memory_space<vmem>>, %arg5: memref<16x1xf32, #tpu.memory_space<vmem>>, %arg6: memref<16x16xf32, #tpu.memory_space<vmem>>, %arg7: memref<16x1xf32, #tpu.memory_space<vmem>>, %arg8: memref<16x256xf32, #tpu.memory_space<vmem>>) attributes {dimension_semantics = [#tpu.dimension_semantics<parallel>], iteration_bounds = array<i64: 4>, scalar_prefetch = 0 : i64, scratch_operands = 0 : i64, tpu.core_type = #tpu.core_type<tc>, window_params = [{transform_indices = @transform_0, window_bounds = array<i64: 4, 256>}, {pipeline_mode = #tpu.pipeline_mode<synchronous>, transform_indices = @transform_1, window_bounds = array<i64: 128, 4>}, {pipeline_mode = #tpu.pipeline_mode<synchronous>, transform_indices = @transform_2, window_bounds = array<i64: 128, 1>}, {pipeline_mode = #tpu.pipeline_mode<synchronous>, transform_indices = @transform_3, window_bounds = array<i64: 16, 128>}, {pipeline_mode = #tpu.pipeline_mode<synchronous>, transform_indices = @transform_4, window_bounds = array<i64: 16, 1>}, {pipeline_mode = #tpu.pipeline_mode<synchronous>, transform_indices = @transform_5, window_bounds = array<i64: 16, 16>}, {pipeline_mode = #tpu.pipeline_mode<synchronous>, transform_indices = @transform_6, window_bounds = array<i64: 16, 1>}, {transform_indices = @transform_7, window_bounds = array<i64: 16, 256>}]} {
    %c0 = arith.constant 0 : index
    %c0_0 = arith.constant 0 : index
    %0 = vector.load %arg1[%c0, %c0_0] : memref<4x256xf32, #tpu.memory_space<vmem>>, vector<4x256xf32>
    %c0_1 = arith.constant 0 : index
    %c0_2 = arith.constant 0 : index
    %1 = vector.load %arg2[%c0_1, %c0_2] : memref<128x4xf32, #tpu.memory_space<vmem>>, vector<128x4xf32>
    %2 = vector.extract_strided_slice %1 {offsets = [0, 0], sizes = [128, 1], strides = [1, 1]} : vector<128x4xf32> to vector<128x1xf32>
    %3 = vector.extract_strided_slice %0 {offsets = [0, 0], sizes = [1, 256], strides = [1, 1]} : vector<4x256xf32> to vector<1x256xf32>
    %4 = vector.broadcast %2 : vector<128x1xf32> to vector<128x256xf32>
    %5 = vector.broadcast %3 : vector<1x256xf32> to vector<128x256xf32>
    %6 = arith.mulf %4, %5 : vector<128x256xf32>
    %7 = vector.extract_strided_slice %1 {offsets = [0, 1], sizes = [128, 1], strides = [1, 1]} : vector<128x4xf32> to vector<128x1xf32>
    %8 = vector.extract_strided_slice %0 {offsets = [1, 0], sizes = [1, 256], strides = [1, 1]} : vector<4x256xf32> to vector<1x256xf32>
    %9 = vector.broadcast %7 : vector<128x1xf32> to vector<128x256xf32>
    %10 = vector.broadcast %8 : vector<1x256xf32> to vector<128x256xf32>
    %11 = arith.mulf %9, %10 : vector<128x256xf32>
    %12 = arith.addf %6, %11 : vector<128x256xf32>
    %13 = vector.extract_strided_slice %1 {offsets = [0, 2], sizes = [128, 1], strides = [1, 1]} : vector<128x4xf32> to vector<128x1xf32>
    %14 = vector.extract_strided_slice %0 {offsets = [2, 0], sizes = [1, 256], strides = [1, 1]} : vector<4x256xf32> to vector<1x256xf32>
    %15 = vector.broadcast %13 : vector<128x1xf32> to vector<128x256xf32>
    %16 = vector.broadcast %14 : vector<1x256xf32> to vector<128x256xf32>
    %17 = arith.mulf %15, %16 : vector<128x256xf32>
    %18 = arith.addf %12, %17 : vector<128x256xf32>
    %19 = vector.extract_strided_slice %1 {offsets = [0, 3], sizes = [128, 1], strides = [1, 1]} : vector<128x4xf32> to vector<128x1xf32>
    %20 = vector.extract_strided_slice %0 {offsets = [3, 0], sizes = [1, 256], strides = [1, 1]} : vector<4x256xf32> to vector<1x256xf32>
    %21 = vector.broadcast %19 : vector<128x1xf32> to vector<128x256xf32>
    %22 = vector.broadcast %20 : vector<1x256xf32> to vector<128x256xf32>
    %23 = arith.mulf %21, %22 : vector<128x256xf32>
    %24 = arith.addf %18, %23 : vector<128x256xf32>
    %c0_3 = arith.constant 0 : index
    %c0_4 = arith.constant 0 : index
    %25 = vector.load %arg3[%c0_3, %c0_4] : memref<128x1xf32, #tpu.memory_space<vmem>>, vector<128x1xf32>
    %26 = vector.broadcast %25 : vector<128x1xf32> to vector<128x256xf32>
    %27 = arith.addf %24, %26 : vector<128x256xf32>
    %cst = arith.constant 0.000000e+00 : f32
    %28 = vector.broadcast %cst : f32 to vector<128x256xf32>
    %29 = arith.maximumf %27, %28 : vector<128x256xf32>
    %c0_5 = arith.constant 0 : index
    %c0_6 = arith.constant 0 : index
    %30 = vector.load %arg4[%c0_5, %c0_6] : memref<16x128xf32, #tpu.memory_space<vmem>>, vector<16x128xf32>
    %cst_7 = arith.constant dense<0.000000e+00> : vector<16x256xf32>
    %31 = tpu.matmul %30, %29, %cst_7 {dimension_numbers = #tpu.dot_dimension_numbers<[1], [0], [0], [1], [0, 0, 1, 1], [], []>} : vector<16x128xf32>, vector<128x256xf32>, vector<16x256xf32> -> vector<16x256xf32>
    %c0_8 = arith.constant 0 : index
    %c0_9 = arith.constant 0 : index
    %32 = vector.load %arg5[%c0_8, %c0_9] : memref<16x1xf32, #tpu.memory_space<vmem>>, vector<16x1xf32>
    %33 = vector.broadcast %32 : vector<16x1xf32> to vector<16x256xf32>
    %34 = arith.addf %31, %33 : vector<16x256xf32>
    %cst_10 = arith.constant 0.000000e+00 : f32
    %35 = vector.broadcast %cst_10 : f32 to vector<16x256xf32>
    %36 = arith.maximumf %34, %35 : vector<16x256xf32>
    %c0_11 = arith.constant 0 : index
    %c0_12 = arith.constant 0 : index
    %37 = vector.load %arg6[%c0_11, %c0_12] : memref<16x16xf32, #tpu.memory_space<vmem>>, vector<16x16xf32>
    %cst_13 = arith.constant dense<0.000000e+00> : vector<16x256xf32>
    %38 = tpu.matmul %37, %36, %cst_13 {dimension_numbers = #tpu.dot_dimension_numbers<[1], [0], [0], [1], [0, 0, 1, 1], [], []>} : vector<16x16xf32>, vector<16x256xf32>, vector<16x256xf32> -> vector<16x256xf32>
    %c0_14 = arith.constant 0 : index
    %c0_15 = arith.constant 0 : index
    %39 = vector.load %arg7[%c0_14, %c0_15] : memref<16x1xf32, #tpu.memory_space<vmem>>, vector<16x1xf32>
    %40 = vector.broadcast %39 : vector<16x1xf32> to vector<16x256xf32>
    %41 = arith.addf %38, %40 : vector<16x256xf32>
    %cst_16 = arith.constant 0.000000e+00 : f32
    %42 = vector.broadcast %cst_16 : f32 to vector<16x256xf32>
    %43 = arith.maximumf %41, %42 : vector<16x256xf32>
    %c0_17 = arith.constant 0 : index
    %c0_18 = arith.constant 0 : index
    %44 = vector.load %arg8[%c0_17, %c0_18] : memref<16x256xf32, #tpu.memory_space<vmem>>, vector<16x256xf32>
    tpu.vector_store %arg8[%c0_17, %c0_18], %43 {strides = array<i32>} : memref<16x256xf32, #tpu.memory_space<vmem>>, vector<16x256xf32>,
    return
  }
  func.func @transform_0(%arg0: i32) -> (i32, i32) {
    %c0_i32 = arith.constant 0 : i32
    %c0_i32_0 = arith.constant 0 : i32
    return %c0_i32, %arg0 : i32, i32
  }
  func.func @transform_1(%arg0: i32) -> (i32, i32) {
    %c0_i32 = arith.constant 0 : i32
    %c0_i32_0 = arith.constant 0 : i32
    %c0_i32_1 = arith.constant 0 : i32
    return %c0_i32, %c0_i32_0 : i32, i32
  }
  func.func @transform_2(%arg0: i32) -> (i32, i32) {
    %c0_i32 = arith.constant 0 : i32
    %c0_i32_0 = arith.constant 0 : i32
    %c0_i32_1 = arith.constant 0 : i32
    return %c0_i32, %c0_i32_0 : i32, i32
  }
  func.func @transform_3(%arg0: i32) -> (i32, i32) {
    %c0_i32 = arith.constant 0 : i32
    %c0_i32_0 = arith.constant 0 : i32
    %c0_i32_1 = arith.constant 0 : i32
    return %c0_i32, %c0_i32_0 : i32, i32
  }
  func.func @transform_4(%arg0: i32) -> (i32, i32) {
    %c0_i32 = arith.constant 0 : i32
    %c0_i32_0 = arith.constant 0 : i32
    %c0_i32_1 = arith.constant 0 : i32
    return %c0_i32, %c0_i32_0 : i32, i32
  }
  func.func @transform_5(%arg0: i32) -> (i32, i32) {
    %c0_i32 = arith.constant 0 : i32
    %c0_i32_0 = arith.constant 0 : i32
    %c0_i32_1 = arith.constant 0 : i32
    return %c0_i32, %c0_i32_0 : i32, i32
  }
  func.func @transform_6(%arg0: i32) -> (i32, i32) {
    %c0_i32 = arith.constant 0 : i32
    %c0_i32_0 = arith.constant 0 : i32
    %c0_i32_1 = arith.constant 0 : i32
    return %c0_i32, %c0_i32_0 : i32, i32
  }
  func.func @transform_7(%arg0: i32) -> (i32, i32) {
    %c0_i32 = arith.constant 0 : i32
    %c0_i32_0 = arith.constant 0 : i32
    return %c0_i32, %arg0 : i32, i32
  }
}

</mosaic_0001>

<bundles_post_ra>
// kernel: tpu_custom_call.1
= control target key start
LH: loop header
LB: loop body
LE: loop exit
PB: predicated region body
PF: predicated region fallthrough
CT: control target
= control target key end

     0   :  { %12 = vsyncpa [#allocation3], 0  ;;  %s2190_s0 = inlined_call_operand.vmem [shape: f32[4,1024], index: 0, kind: input, shape index: {}]   ;;  %s2191_s1 = inlined_call_operand.vmem [shape: f32[128,4], index: 1, kind: input, shape index: {}]   ;;  %s2192_s2 = inlined_call_operand.vmem [shape: f32[128,1], index: 2, kind: input, shape index: {}]   ;;  %s2193_s3 = inlined_call_operand.vmem [shape: f32[16,128], index: 3, kind: input, shape index: {}]   ;;  %s2194_s4 = inlined_call_operand.vmem [shape: f32[16,1], index: 4, kind: input, shape index: {}]   ;;  %s2195_s5 = inlined_call_operand.vmem [shape: f32[16,16], index: 5, kind: input, shape index: {}]   ;;  %s2196_s6 = inlined_call_operand.vmem [shape: f32[16,1], index: 6, kind: input, shape index: {}]   ;;  %s2197_s7 = inlined_call_operand.hbm [shape: f32[16,1024], index: 7, kind: output, shape index: {}]  }
   0x1   :  { %14 = vsyncpa [#allocation3 + $0x1], 0  ;;  %s1556_s24 = smov 0   ;;  %s1558_s25 = smov 0  }
   0x2   :  { %s1560_s26 = smov 0   ;;  %s1562_s27 = smov 0  }
   0x3 LB: > { %s1577_s28 = sadd.s32 4294967295, %s1505_s27   ;;  %s1303_s29 = sadd.s32 4294967294, %s1505_s27   ;;  %s1505_s27 = sphi %s1562_s27, %s2203_s27   ;;  %s1501_s26 = sphi %s1560_s26, %s2202_s26   ;;  %s1497_s25 = sphi %s1558_s25, %s2201_s25   ;;  %s1493_s24 = sphi %s1556_s24, %s2200_s24  }
   0x4   : > { %s1581_s30 = sadd.s32 1, %s1505_s27   ;;  %s179_s8 = sadd.s32 1, %s1501_s26 }
   0x5   : > { %s176_s9 = ssub.s32 %s1505_s27, %s1581_s30  ;;  %p189_p0 = scmp.ne.s32.totalorder %s1501_s26, %s1497_s25 }
   0x6   : > { %p177_p1 = scmp.eq.s32.totalorder %s176_s9, 0  ;;  %p190_p2 = scmp.eq.s32.totalorder %s1577_s28, 3 }
   0x7   : > { %p195_p3 = scmp.ne.s32.totalorder %s1497_s25, %s1493_s24  ;;  %p196_p4 = scmp.eq.s32.totalorder %s1303_s29, 3 }
   0x8   : > { %s1592_s10 = scalar_select %p177_p1, %s1501_s26, %s179_s8  }
   0x9   : > { %p1594_p5 = por %p190_p2, %p189_p0  ;;  %p1598_p6 = por %p196_p4, %p195_p3 }
   0xa   : > { %p1306_p7 = scmp.ge.s32.totalorder %s1505_s27, 1  ;;  %p241_p8 = scmp.lt.s32.totalorder %s1505_s27, 5 }
   0xc   : > { %p242_p9 = pnand %p1306_p7, %p241_p8 }
   0xd   : > { %v285_v0 = vld [vmem:[%s2191_s1 + $0x20] sm:$0xff] (!%p242_p9)  ;;  %v1507_v2 = vmov (!%p242_p9), 1   ;;  %v282_v4 = vld [vmem:[%s2191_s1 + $0x8] sm:$0xff] (!%p242_p9)  ;;  %v1508_v6 = vmov (!%p242_p9), 2   ;;  %v283_v7 = vld [vmem:[%s2191_s1 + $0x10] sm:$0xff] (!%p242_p9)  ;;  %v1509_v8 = vmov (!%p242_p9), 0   ;;  %v378_v39 = vlaneseq (!%p242_p9) }
   0xe   : > { %245 = sbr.rel (%p242_p9) target bundleno = 858 (0x35a), region = 48  ;;  %v281_v1 = vld [vmem:[%s2191_s1] sm:$0xff] (!%p242_p9)  ;;  %1408 = vset.pattern.permute.xlu0 (!%p242_p9), %v1507_v2  ;;  %1401 = vset.pattern.permute.xlu1 (!%p242_p9), %v1507_v2  ;;  %v284_v9 = vld [vmem:[%s2191_s1 + $0x18] sm:$0xff] (!%p242_p9)  ;;  %v1510_v10 = vmov (!%p242_p9), 3   ;;  %v286_v11 = vld [vmem:[%s2191_s1 + $0x28] sm:$0xff] (!%p242_p9)  ;;  %s1308_s23 = sshll.u32 (!%p242_p9), %s1577_s28, 1 }
   0xf   : > { %445 = vperm.xlu0 (!%p242_p9), %1408, %v285_v0   ;;  %429 = vperm.xlu1 (!%p242_p9), %1401, %v281_v1   ;;  %v1615_v3 = vld [vmem:[%s2191_s1 + $0x40] sm:$0xff] (!%p242_p9)  ;;  %v288_v12 = vld [vmem:[%s2191_s1 + $0x38] sm:$0xff] (!%p242_p9)  ;;  %v867_v15 = vld [vmem:[%s2192_s2 + $0x8] sm:$0xff] (!%p242_p9)  ;;  %p274_p10 = scmp.lt.s32.totalorder (!%p242_p9), %s1308_s23, 7  ;;  %v379_v43 = vshrl.u32 (!%p242_p9), %v378_v39, 7  ;;  %vm1135_vm0 = vcmask (!%p242_p9), 130048  }
  0x10   : > { %v1624_v5 = vld [vmem:[%s2191_s1 + $0x60] sm:$0xff] (!%p242_p9)  ;;  %v1655_v13 = vld [vmem:[%s2191_s1 + $0x58] sm:$0xff] (!%p242_p9)  ;;  %v1669_v16 = vld [vmem:[%s2191_s1 + $0x70] sm:$0xff] (!%p242_p9)  ;;  %s270_s14 = sand.u32 (!%p242_p9), 1, %s1497_s25   ;;  %s1317_s18 = sshll.u32 (!%p242_p9), %s1577_s28, 8 }
  0x11   : > { %v866_v14 = vld [vmem:[%s2192_s2] sm:$0xff] (!%p242_p9)  ;;  %v287_v17 = vld [vmem:[%s2191_s1 + $0x30] sm:$0xff] (!%p242_p9)  ;;  %v869_v18 = vld [vmem:[%s2192_s2 + $0x18] sm:$0xff] (!%p242_p9)  ;;  %v494_v46 = vsub.s32 (!%p242_p9), 1, %v379_v43  ;;  %v498_v47 = vsub.s32 (!%p242_p9), 5, %v379_v43  ;;  %v380_v49 = vsub.s32 (!%p242_p9), 0, %v379_v43  ;;  %s2147_s21 = scalar_lea.hbm (!%p242_p9), %s2197_s7, %s1317_s18 }
  0x12   : > { %v868_v19 = vld [vmem:[%s2192_s2 + $0x10] sm:$0xff] (!%p242_p9)  ;;  %v873_v20 = vld [vmem:[%s2192_s2 + $0x38] sm:$0xff] (!%p242_p9)  ;;  %v290_v22 = vld [vmem:[%s2191_s1 + $0x48] sm:$0xff] (!%p242_p9)  ;;  %v384_v50 = vsub.s32 (!%p242_p9), 4, %v379_v43  ;;  %v640_v53 = vsub.s32 (!%p242_p9), 2, %v379_v43  ;;  %v644_v54 = vsub.s32 (!%p242_p9), 6, %v379_v43 }
  0x13   : > { %461 = vperm.xlu0 (!%p242_p9), %1408, %v1615_v3   ;;  %433 = vperm.xlu1 (!%p242_p9), %1401, %v282_v4   ;;  %v1697_v21 = vld [vmem:[%s2191_s1 + $0x78] sm:$0xff] (!%p242_p9)  ;;  %v879_v24 = vld [vmem:[%s2192_s2 + $0x68] sm:$0xff] (!%p242_p9)  ;;  %v1028_v25 = vld [vmem:[%s2194_s4] sm:$0xff] (!%p242_p9)  ;;  %v786_v59 = vsub.s32 (!%p242_p9), 3, %v379_v43  ;;  %v790_v60 = vsub.s32 (!%p242_p9), 7, %v379_v43  ;;  %s2149_s28 = scalar_lea.sflag (!%p242_p9), [#allocation3], %s270_s14 }
  0x14   : > { %v877_v23 = vld [vmem:[%s2192_s2 + $0x58] sm:$0xff] (!%p242_p9)  ;;  %v870_v26 = vld [vmem:[%s2192_s2 + $0x20] sm:$0xff] (!%p242_p9)  ;;  %v871_v28 = vld [vmem:[%s2192_s2 + $0x28] sm:$0xff] (!%p242_p9) }
  0x15   : > { %v1123_v27 = vld [vmem:[%s2196_s6] sm:$0xff]  ;;  %v1731_v31 = vld [vmem:[%s2191_s1 + $0x50] sm:$0xff]  ;;  %s2205_s23 = smov (!%p274_p10, %s1308_s23), 7 }
  0x16   : > { %s1309_s29 = sshll.u32 %s2205_s23, 2  ;;  %v872_v42 = vld [vmem:[%s2192_s2 + $0x30] sm:$0xff]  ;;  %s1512_s23 = smov [#allocation2]  }
  0x17   : > { %477 = vperm.xlu0 %1408, %v1624_v5   ;;  %1402 = vset.pattern.permute.xlu1 %v1508_v6  ;;  %s277_s15 = scalar_lea.vmem %s2190_s0, %s1309_s29  ;;  %s1447_s29 = sshll.u32 %s1512_s23, 4  ;;  %s1448_s29 = int_to_ptr.vmem [resolvable:$false] %s1447_s29 }
  0x18   : > { %579 = vperm.xlu1 %1402, %v282_v4   ;;  %v280_v48 = vld [vmem:[%s277_s15] sm:$0xff]  ;;  %s1307_s15 = sshll.u32 %s270_s14, 5  ;;  %s1449_s8 = scalar_lea.vmem %s1448_s29, 1024 }
  0x19   : > { %v495_v55 = vrot.slane %v280_v48, %v494_v46  ;;  %v499_v56 = vrot.slane %v280_v48, %v498_v47  ;;  %v381_v57 = vrot.slane %v280_v48, %v380_v49  ;;  %v385_v58 = vrot.slane %v280_v48, %v384_v50  ;;  %s272_s16 = scalar_lea.vmem [#allocation2], %s1307_s15 }
  0x1a   : > { %v641_v62 = vrot.slane %v280_v48, %v640_v53  ;;  %v645_v63 = vrot.slane %v280_v48, %v644_v54  ;;  %s1241_s17 = sshll.u32 %s272_s16, 4  ;;  %s2142_s17 = int_to_ptr.vmem [resolvable:$true] %s1241_s17 }
  0x1b   : > { %1429 = vset.pattern.permute.xlu0 %v1508_v6  ;;  %s1443_s22 = scalar_lea.vmem %s2142_s17, 512  ;;  %p1450_p0 = scmp.lt.s32.totalorder %s2142_s17, %s1448_s29 }
  0x1c   : > { %575 = vperm.xlu0 %1429, %v281_v1   ;;  %1403 = vset.pattern.permute.xlu1 %v1509_v8  ;;  %p1444_p11 = scmp.ne.s32.totalorder %s2142_s17, %s1443_s22  ;;  %p1451_p1 = scmp.lt.s32.totalorder %s1449_s8, %s1443_s22 }
  0x1d   : > { %309 = vperm.xlu1 %1403, %v283_v7  }
  0x1e   : > { %p1445_p12 = pnand %p1444_p11, %p1594_p5  ;;  %p1452_p2 = por %p1451_p1, %p1450_p0 }
  0x20   : > { %587 = vperm.xlu0 %1429, %v284_v9   ;;  %p1446_p13 = pneg %p1445_p12 }
  0x21   : > { %1404 = vset.pattern.permute.xlu1 %v1507_v2 }
  0x22   : > { %437 = vperm.xlu1 %1404, %v283_v7   ;;  %p1453_p3 = pnand %p1452_p2, %p1446_p13 }
  0x24   : > { %591 = vperm.xlu0 %1429, %v285_v0  }
  0x26   : > { %441 = vperm.xlu1 %1404, %v284_v9  }
  0x28   : > { %607 = vperm.xlu0 %1429, %v1615_v3  }
  0x2a   : > { %1405 = vset.pattern.permute.xlu1 %v1510_v10 }
  0x2b   : > { %725 = vperm.xlu1 %1405, %v282_v4  }
  0x2c   : > { %623 = vperm.xlu0 %1429, %v1624_v5  }
  0x2f   : > { %1406 = vset.pattern.permute.xlu1 %v1508_v6 }
  0x30   : > { %1433 = vset.pattern.permute.xlu0 %v1510_v10  ;;  %583 = vperm.xlu1 %1406, %v283_v7  }
  0x31   : > { %721 = vperm.xlu0 %1433, %v281_v1  }
  0x34   : > { %1407 = vset.pattern.permute.xlu1 %v1509_v8 }
  0x35   : > { %733 = vperm.xlu0 %1433, %v284_v9   ;;  %319 = vperm.xlu1 %1407, %v285_v0  }
  0x39   : > { %737 = vperm.xlu0 %1433, %v285_v0   ;;  %324 = vperm.xlu1 %1407, %v286_v11  }
  0x3d   : > { %749 = vperm.xlu0 %1433, %v288_v12   ;;  %1409 = vset.pattern.permute.xlu1 %v1507_v2 }
  0x3e   : > { %449 = vperm.xlu1 %1409, %v286_v11  }
  0x41   : > { %753 = vperm.xlu0 %1433, %v1615_v3  }
  0x42   : > { %1410 = vset.pattern.permute.xlu1 %v1510_v10 }
  0x43   : > { %729 = vperm.xlu1 %1410, %v283_v7   ;;  %v1789_v7 = vld [vmem:[%s2191_s1 + $0x68] sm:$0xff] }
  0x45   : > { %765 = vperm.xlu0 %1433, %v1655_v13  }
  0x47   : > { %1411 = vset.pattern.permute.xlu1 %v1509_v8 }
  0x48   : > { %884 = vperm.xlu1 %1411, %v866_v14   ;;  %v791_v14 = vrot.slane %v280_v48, %v790_v60 }
  0x49   : > { %769 = vperm.xlu0 %1433, %v1624_v5  }
  0x4c   : > { %889 = vperm.xlu1 %1411, %v867_v15   ;;  %v1795_v15 = vrot.slane %v645_v63, %v640_v53 }
  0x4d   : > { %777 = vperm.xlu0 %1433, %v1669_v16  }
  0x50   : > { %1412 = vset.pattern.permute.xlu1 %v1508_v6 }
  0x51   : > { %1440 = vset.pattern.permute.xlu0 %v1509_v8  ;;  %595 = vperm.xlu1 %1412, %v286_v11  }
  0x52   : > { %299 = vperm.xlu0 %1440, %v281_v1   ;;  %v1778_v1 = vrot.slane %v495_v55, %v494_v46 }
  0x55   : > { %1413 = vset.pattern.permute.xlu1 %v1509_v8 }
  0x56   : > { %304 = vperm.xlu0 %1440, %v282_v4   ;;  %329 = vperm.xlu1 %1413, %v287_v17   ;;  %v1782_v4 = vrot.slane %v381_v57, %v380_v49 }
  0x5a   : > { %314 = vperm.xlu0 %1440, %v284_v9   ;;  %1414 = vset.pattern.permute.xlu1 %v1507_v2 }
  0x5b   : > { %453 = vperm.xlu1 %1414, %v287_v17  }
  0x5e   : > { %334 = vperm.xlu0 %1440, %v288_v12  }
  0x5f   : > { %457 = vperm.xlu1 %1414, %v288_v12  }
  0x62   : > { %899 = vperm.xlu0 %1440, %v869_v18  }
  0x63   : > { %1415 = vset.pattern.permute.xlu1 %v1510_v10 }
  0x64   : > { %741 = vperm.xlu1 %1415, %v286_v11  }
  0x66   : > { %339 = vperm.xlu0 %1440, %v1615_v3   ;;  %v1780_v3 = vrot.slane %v499_v56, %v494_v46  ;;  %v875_v56 = vld [vmem:[%s2192_s2 + $0x48] sm:$0xff] }
  0x68   : > { %1416 = vset.pattern.permute.xlu1 %v1509_v8 }
  0x69   : > { %894 = vperm.xlu1 %1416, %v868_v19  }
  0x6a   : > { %354 = vperm.xlu0 %1440, %v1655_v13  }
  0x6d   : > { %1417 = vset.pattern.permute.xlu1 %v1508_v6 }
  0x6e   : > { %599 = vperm.xlu1 %1417, %v287_v17   ;;  %919 = vperm.xlu0 %1440, %v873_v20  }
  0x72   : > { %603 = vperm.xlu1 %1417, %v288_v12   ;;  %359 = vperm.xlu0 %1440, %v1624_v5   ;;  %v1784_v5 = vrot.slane %v385_v58, %v380_v49  ;;  %v787_v12 = vrot.slane %v280_v48, %v786_v59 }
  0x76   : > { %1418 = vset.pattern.permute.xlu1 %v1509_v8  ;;  %374 = vperm.xlu0 %1440, %v1697_v21  }
  0x77   : > { %344 = vperm.xlu1 %1418, %v290_v22  }
  0x7a   : > { %939 = vperm.xlu0 %1440, %v877_v23  }
  0x7b   : > { %1419 = vset.pattern.permute.xlu1 %v1507_v2 }
  0x7c   : > { %465 = vperm.xlu1 %1419, %v290_v22  }
  0x7e   : > { %949 = vperm.xlu0 %1440, %v879_v24   ;;  %v1805_v24 = vrot.slane %v787_v12, %v786_v59 }
  0x80   : > { %1420 = vset.pattern.permute.xlu1 %v1510_v10 }
  0x81   : > { %745 = vperm.xlu1 %1420, %v287_v17  }
  0x82   : > { %1032 = vperm.xlu0 %1440, %v1028_v25   ;;  %v1807_v25 = vrot.slane %v791_v14, %v786_v59 }
  0x85   : > { %1421 = vset.pattern.permute.xlu1 %v1509_v8 }
  0x86   : > { %904 = vperm.xlu1 %1421, %v870_v26   ;;  %1127 = vperm.xlu0 %1440, %v1123_v27  }
  0x8a   : > { %909 = vperm.xlu1 %1421, %v871_v28  }
  0x8e   : > { %1422 = vset.pattern.permute.xlu1 %v1508_v6  ;;  %v1726_v29 = vpop.permute.xlu1 %429  ;;  %v446_v30 = vpop.permute.xlu0 %445 }
  0x8f   : > { %611 = vperm.xlu1 %1422, %v290_v22   ;;  %v518_v9 = vmul.f32 %v1778_v1, %v446_v30  ;;  %v519_v11 = vmul.f32 %v1780_v3, %v446_v30  ;;  %v511_v63 = vmul.f32 %v1780_v3, %v1726_v29 }
  0x92   : > { %v1733_v32 = vpop.permute.xlu1 %433  ;;  %v1735_v33 = vpop.permute.xlu0 %461 }
  0x93   : > { %1423 = vset.pattern.permute.xlu1 %v1509_v8 }
  0x94   : > { %349 = vperm.xlu1 %1423, %v1731_v31  }
  0x96   : > { %v1739_v34 = vpop.permute.xlu0 %477 }
  0x97   : > { %v1741_v35 = vpop.permute.xlu1 %579 }
  0x98   : > { %1424 = vset.pattern.permute.xlu1 %v1507_v2 }
  0x99   : > { %469 = vperm.xlu1 %1424, %v1731_v31  }
  0x9b   : > { %v1746_v36 = vpop.permute.xlu0 %575 }
  0x9c   : > { %v1748_v37 = vpop.permute.xlu1 %309  ;;  %v657_v12 = vmul.f32 %v1795_v15, %v1746_v36 }
  0x9d   : > { %473 = vperm.xlu1 %1424, %v1655_v13  }
  0x9f   : > { %v1751_v38 = vpop.permute.xlu0 %587 }
  0xa1   : > { %1425 = vset.pattern.permute.xlu1 %v1510_v10  ;;  %v1754_v40 = vpop.permute.xlu1 %437 }
  0xa2   : > { %757 = vperm.xlu1 %1425, %v290_v22  }
  0xa3   : > { %v592_v41 = vpop.permute.xlu0 %591 }
  0xa4   : > { %v665_v23 = vmul.f32 %v1795_v15, %v592_v41 }
  0xa5   : > { %v1759_v44 = vpop.permute.xlu1 %441 }
  0xa6   : > { %1426 = vset.pattern.permute.xlu1 %v1509_v8 }
  0xa7   : > { %914 = vperm.xlu1 %1426, %v872_v42   ;;  %v1765_v45 = vpop.permute.xlu0 %607 }
  0xaa   : > { %v1767_v51 = vpop.permute.xlu1 %725 }
  0xab   : > { %1427 = vset.pattern.permute.xlu1 %v1508_v6  ;;  %v1770_v52 = vpop.permute.xlu0 %623 }
  0xac   : > { %615 = vperm.xlu1 %1427, %v1731_v31  }
  0xaf   : > { %v1773_v61 = vpop.permute.xlu1 %583 }
  0xb0   : > { %v1775_v0 = vpop.permute.xlu0 %721  ;;  %619 = vperm.xlu1 %1427, %v1655_v13   ;;  %v1793_v13 = vrot.slane %v641_v62, %v640_v53  ;;  %v874_v53 = vld [vmem:[%s2192_s2 + $0x40] sm:$0xff]  ;;  %v510_v62 = vmul.f32 %v1778_v1, %v1726_v29  ;;  %v512_v29 = vmul.f32 %v1778_v1, %v1733_v32 }
  0xb2   : > { %v664_v22 = vmul.f32 %v1793_v13, %v592_v41 }
  0xb4   : > { %v1797_v17 = vpop.permute.xlu0 %733  ;;  %1428 = vset.pattern.permute.xlu1 %v1509_v8  ;;  %v320_v18 = vpop.permute.xlu1 %319 }
  0xb5   : > { %v404_v19 = vmul.f32 %v1782_v4, %v320_v18  ;;  %v405_v20 = vmul.f32 %v1784_v5, %v320_v18  ;;  %364 = vperm.xlu1 %1428, %v1789_v7  }
  0xb7   : > { %v550_v26 = vadd.f32 %v518_v9, %v404_v19  ;;  %v551_v27 = vadd.f32 %v519_v11, %v405_v20  ;;  %v656_v11 = vmul.f32 %v1793_v13, %v1746_v36  ;;  %v803_v36 = vmul.f32 %v1807_v25, %v1775_v0 }
  0xb8   : > { %v738_v28 = vpop.permute.xlu0 %737  ;;  %v1809_v30 = vpop.permute.xlu1 %324 }
  0xb9   : > { %v810_v39 = vmul.f32 %v1805_v24, %v738_v28  ;;  %v811_v42 = vmul.f32 %v1807_v25, %v738_v28  ;;  %1430 = vset.pattern.permute.xlu1 %v1507_v2  ;;  %v696_v43 = vadd.f32 %v664_v22, %v550_v26  ;;  %v697_v46 = vadd.f32 %v665_v23, %v551_v27 }
  0xba   : > { %481 = vperm.xlu1 %1430, %v1789_v7   ;;  %v513_v22 = vmul.f32 %v1780_v3, %v1733_v32  ;;  %v802_v23 = vmul.f32 %v1805_v24, %v1775_v0  ;;  %v659_v32 = vmul.f32 %v1795_v15, %v1741_v35  ;;  %v663_v0 = vmul.f32 %v1795_v15, %v1751_v38 }
  0xbb   : > { %v1817_v47 = vadd.f32 %v810_v39, %v696_v43  ;;  %v1819_v48 = vadd.f32 %v811_v42, %v697_v46  ;;  %v658_v46 = vmul.f32 %v1793_v13, %v1741_v35  ;;  %v805_v35 = vmul.f32 %v1807_v25, %v1767_v51 }
  0xbc   : > { %v1815_v41 = vpop.permute.xlu0 %749 }
  0xbd   : > { %v1821_v49 = vpop.permute.xlu1 %449 }
  0xbe   : > { %1431 = vset.pattern.permute.xlu1 %v1510_v10 }
  0xbf   : > { %761 = vperm.xlu1 %1431, %v1731_v31  }
  0xc0   : > { %v1825_v50 = vpop.permute.xlu0 %753 }
  0xc2   : > { %v1830_v54 = vpop.permute.xlu1 %729 }
  0xc3   : > { %1432 = vset.pattern.permute.xlu1 %v1509_v8 }
  0xc4   : > { %924 = vperm.xlu1 %1432, %v874_v53   ;;  %v1833_v55 = vpop.permute.xlu0 %765  ;;  %v662_v53 = vmul.f32 %v1793_v13, %v1751_v38 }
  0xc7   : > { %v885_v57 = vpop.permute.xlu1 %884 }
  0xc8   : > { %929 = vperm.xlu1 %1432, %v875_v56   ;;  %v1838_v31 = vpop.permute.xlu0 %769  ;;  %v516_v56 = vmul.f32 %v1778_v1, %v1759_v44 }
  0xcb   : > { %v1840_v58 = vpop.permute.xlu1 %889 }
  0xcc   : > { %1434 = vset.pattern.permute.xlu1 %v1508_v6  ;;  %v1843_v59 = vpop.permute.xlu0 %777 }
  0xcd   : > { %627 = vperm.xlu1 %1434, %v1789_v7  }
  0xd0   : > { %v1846_v60 = vpop.permute.xlu1 %595 }
  0xd1   : > { %v300_v9 = vpop.permute.xlu0 %299  ;;  %1435 = vset.pattern.permute.xlu1 %v1509_v8 }
  0xd2   : > { %v396_v14 = vmul.f32 %v1782_v4, %v300_v9  ;;  %v397_v18 = vmul.f32 %v1784_v5, %v300_v9  ;;  %369 = vperm.xlu1 %1435, %v1669_v16   ;;  %v804_v9 = vmul.f32 %v1805_v24, %v1767_v51 }
  0xd4   : > { %v542_v19 = vadd.f32 %v510_v62, %v396_v14  ;;  %v543_v20 = vadd.f32 %v511_v63, %v397_v18 }
  0xd5   : > { %v305_v26 = vpop.permute.xlu0 %304  ;;  %v330_v27 = vpop.permute.xlu1 %329 }
  0xd6   : > { %v688_v28 = vadd.f32 %v656_v11, %v542_v19  ;;  %v689_v39 = vadd.f32 %v657_v12, %v543_v20  ;;  %v398_v42 = vmul.f32 %v1782_v4, %v305_v26  ;;  %v399_v43 = vmul.f32 %v1784_v5, %v305_v26  ;;  %1436 = vset.pattern.permute.xlu1 %v1507_v2 }
  0xd7   : > { %485 = vperm.xlu1 %1436, %v1669_v16   ;;  %v517_v2 = vmul.f32 %v1780_v3, %v1759_v44  ;;  %v408_v44 = vmul.f32 %v1782_v4, %v330_v27 }
  0xd8   : > { %v544_v62 = vadd.f32 %v512_v29, %v398_v42  ;;  %v545_v63 = vadd.f32 %v513_v22, %v399_v43  ;;  %v835_v12 = vadd.f32 %v803_v36, %v689_v39  ;;  %v834_v14 = vadd.f32 %v802_v23, %v688_v28 }
  0xd9   : > { %v315_v11 = vpop.permute.xlu0 %314  ;;  %v409_v29 = vmul.f32 %v1784_v5, %v330_v27  ;;  %v514_v27 = vmul.f32 %v1778_v1, %v1754_v40 }
  0xda   : > { %v690_v38 = vadd.f32 %v658_v46, %v544_v62  ;;  %v691_v18 = vadd.f32 %v659_v32, %v545_v63  ;;  %v402_v19 = vmul.f32 %v1782_v4, %v315_v11  ;;  %v403_v20 = vmul.f32 %v1784_v5, %v315_v11  ;;  %v454_v26 = vpop.permute.xlu1 %453 }
  0xdb   : > { %v522_v22 = vmul.f32 %v1778_v1, %v454_v26  ;;  %v523_v42 = vmul.f32 %v1780_v3, %v454_v26  ;;  %489 = vperm.xlu1 %1436, %v1697_v21   ;;  %v963_v32 = vadd.f32 %v885_v57, %v835_v12  ;;  %v962_v62 = vadd.f32 %v885_v57, %v834_v14 }
  0xdc   : > { %v548_v51 = vadd.f32 %v516_v56, %v402_v19  ;;  %v549_v36 = vadd.f32 %v517_v2, %v403_v20  ;;  %v837_v23 = vadd.f32 %v805_v35, %v691_v18  ;;  %v836_v28 = vadd.f32 %v804_v9, %v690_v38 }
  0xdd   : > { %v1895_v39 = vadd.f32 %v522_v22, %v408_v44  ;;  %v1897_v43 = vadd.f32 %v523_v42, %v409_v29  ;;  %v1899_v46 = vpop.permute.xlu0 %334  ;;  %v515_v63 = vmul.f32 %v1780_v3, %v1754_v40  ;;  %v808_v56 = vmul.f32 %v1805_v24, %v1797_v17  ;;  %v876_v29 = vld [vmem:[%s2192_s2 + $0x50] sm:$0xff] }
  0xde   : > { %v809_v2 = vmul.f32 %v1807_v25, %v1797_v17  ;;  %v1909_v9 = vpop.permute.xlu1 %457  ;;  %v694_v35 = vadd.f32 %v662_v53, %v548_v51  ;;  %v695_v11 = vadd.f32 %v663_v0, %v549_v36  ;;  %v965_v57 = vadd.f32 %v1840_v58, %v837_v23 }
  0xdf   : > { %1437 = vset.pattern.permute.xlu1 %v1510_v10  ;;  %v964_v12 = vadd.f32 %v1840_v58, %v836_v28  ;;  %v400_v14 = vmul.f32 %v1782_v4, %v1748_v37  ;;  %v401_v40 = vmul.f32 %v1784_v5, %v1748_v37  ;;  %v660_v38 = vmul.f32 %v1793_v13, %v1773_v61 }
  0xe0   : > { %v661_v17 = vmul.f32 %v1795_v15, %v1773_v61  ;;  %773 = vperm.xlu1 %1437, %v1789_v7   ;;  %v995_v0 = vmax.f32 %v963_v32, 0.0  ;;  %v997_v18 = vmax.f32 %v965_v57, 0.0  ;;  %v994_v19 = vmax.f32 %v962_v62, 0.0 }
  0xe1   : > { %v900_v53 = vpop.permute.xlu0 %899  ;;  %v996_v20 = vmax.f32 %v964_v12, 0.0  ;;  %v546_v58 = vadd.f32 %v514_v27, %v400_v14  ;;  %v547_v26 = vadd.f32 %v515_v63, %v401_v40  ;;  %v806_v44 = vmul.f32 %v1805_v24, %v1830_v54 }
  0xe2   : > { %v807_v37 = vmul.f32 %v1807_v25, %v1830_v54  ;;  %v840_v61 = vadd.f32 %v808_v56, %v694_v35  ;;  %v841_v22 = vadd.f32 %v809_v2, %v695_v11  ;;  %v1318_v42 = vpack.c.bf16 %v997_v18, %v995_v0 }
  0xe3   : > { %v1930_v7 = vpop.permute.xlu1 %741  ;;  %v1320_v51 = vpack.c.bf16 %v996_v20, %v994_v19  ;;  %v526_v36 = vmul.f32 %v1778_v1, %v1735_v33  ;;  %v527_v23 = vmul.f32 %v1780_v3, %v1735_v33  ;;  %v692_v28 = vadd.f32 %v660_v38, %v546_v58 }
  0xe4   : > { %1438 = vset.pattern.permute.xlu1 %v1509_v8  ;;  %v693_v54 = vadd.f32 %v661_v17, %v547_v26  ;;  %1319 = vmatprep.subr.bf16.mxu0 %v1318_v42  ;;  %v672_v62 = vmul.f32 %v1793_v13, %v1765_v45  ;;  %v673_v27 = vmul.f32 %v1795_v15, %v1765_v45 }
  0xe5   : > { %934 = vperm.xlu1 %1438, %v876_v29   ;;  %v340_v32 = vpop.permute.xlu0 %339  ;;  %1321 = vmatpush1.bf16.msra.mxu0 %v1320_v51  ;;  %v968_v2 = vadd.f32 %v900_v53, %v840_v61  ;;  %v969_v33 = vadd.f32 %v900_v53, %v841_v22  ;;  %v838_v35 = vadd.f32 %v806_v44, %v692_v28 }
  0xe6   : > { %v412_v63 = vmul.f32 %v1782_v4, %v340_v32  ;;  %v413_v56 = vmul.f32 %v1784_v5, %v340_v32  ;;  %v839_v11 = vadd.f32 %v807_v37, %v693_v54  ;;  %v818_v57 = vmul.f32 %v1805_v24, %v1825_v50 }
  0xe7   : > { %v819_v12 = vmul.f32 %v1807_v25, %v1825_v50  ;;  %v1000_v19 = vmax.f32 %v968_v2, 0.0  ;;  %v1001_v20 = vmax.f32 %v969_v33, 0.0  ;;  %v680_v28 = vmul.f32 %v1793_v13, %v1770_v52 }
  0xe8   : > { %v895_v14 = vpop.permute.xlu1 %894  ;;  %v558_v40 = vadd.f32 %v526_v36, %v412_v63  ;;  %v559_v38 = vadd.f32 %v527_v23, %v413_v56  ;;  %v681_v54 = vmul.f32 %v1795_v15, %v1770_v52 }
  0xe9   : > { %v966_v17 = vadd.f32 %v895_v14, %v838_v35  ;;  %v967_v45 = vadd.f32 %v895_v14, %v839_v11  ;;  %1439 = vset.pattern.permute.xlu1 %v1508_v6  ;;  %v1948_v0 = vpop.permute.xlu0 %354  ;;  %v534_v6 = vmul.f32 %v1778_v1, %v1739_v34 }
  0xea   : > { %631 = vperm.xlu1 %1439, %v1669_v16   ;;  %v704_v53 = vadd.f32 %v672_v62, %v558_v40  ;;  %v705_v18 = vadd.f32 %v673_v27, %v559_v38  ;;  %v535_v16 = vmul.f32 %v1780_v3, %v1739_v34  ;;  %v826_v62 = vmul.f32 %v1805_v24, %v1838_v31  ;;  %v878_v27 = vld [vmem:[%s2192_s2 + $0x60] sm:$0xff] }
  0xeb   : > { %v998_v58 = vmax.f32 %v966_v17, 0.0  ;;  %v999_v26 = vmax.f32 %v967_v45, 0.0  ;;  %v520_v38 = vmul.f32 %v1778_v1, %v1821_v49  ;;  %v521_v17 = vmul.f32 %v1780_v3, %v1821_v49 }
  0xec   : > { %v1951_v44 = vadd.f32 %v818_v57, %v704_v53  ;;  %v1953_v50 = vadd.f32 %v819_v12, %v705_v18  ;;  %v881_v12 = vld [vmem:[%s2192_s2 + $0x78] sm:$0xff]  ;;  %v406_v53 = vmul.f32 %v1782_v4, %v1809_v30  ;;  %v666_v18 = vmul.f32 %v1793_v13, %v1846_v60 }
  0xed   : > { %v1955_v37 = vpop.permute.xlu1 %599  ;;  %v1322_v29 = vpack.c.bf16 %v1001_v20, %v999_v26  ;;  %v1324_v61 = vpack.c.bf16 %v1000_v19, %v998_v58  ;;  %v1957_v22 = vpop.permute.xlu0 %919  ;;  %v1029_v19 = vld [vmem:[%s2194_s4 + $0x8] sm:$0xff]  ;;  %v407_v20 = vmul.f32 %v1784_v5, %v1809_v30  ;;  %v667_v58 = vmul.f32 %v1795_v15, %v1846_v60 }
  0xee   : > { %635 = vperm.xlu1 %1439, %v1697_v21   ;;  %v552_v26 = vadd.f32 %v520_v38, %v406_v53  ;;  %v812_v49 = vmul.f32 %v1805_v24, %v1930_v7 }
  0xef   : > { %1323 = vmatprep.subr.bf16.mxu0 %v1322_v29  ;;  %v553_v29 = vadd.f32 %v521_v17, %v407_v20 }
  0xf0   : > { %1325 = vmatpush1.bf16.msra.mxu0 %v1324_v61  ;;  %v813_v61 = vmul.f32 %v1807_v25, %v1930_v7 }
  0xf1   : > { %v1964_v42 = vpop.permute.xlu1 %603  ;;  %v360_v51 = vpop.permute.xlu0 %359 }
  0xf2   : > { %1441 = vset.pattern.permute.xlu1 %v1510_v10  ;;  %v420_v36 = vmul.f32 %v1782_v4, %v360_v51  ;;  %v421_v23 = vmul.f32 %v1784_v5, %v360_v51  ;;  %v827_v10 = vmul.f32 %v1807_v25, %v1838_v31  ;;  %v1124_v51 = vld [vmem:[%s2196_s6 + $0x8] sm:$0xff] }
  0xf3   : > { %781 = vperm.xlu1 %1441, %v1697_v21   ;;  %v880_v21 = vld [vmem:[%s2192_s2 + $0x70] sm:$0xff] }
  0xf4   : > { %v566_v32 = vadd.f32 %v534_v6, %v420_v36  ;;  %v567_v34 = vadd.f32 %v535_v16, %v421_v23  ;;  %v698_v6 = vadd.f32 %v666_v18, %v552_v26  ;;  %v699_v36 = vadd.f32 %v667_v58, %v553_v29 }
  0xf5   : > { %v816_v26 = vmul.f32 %v1805_v24, %v1815_v41 }
  0xf6   : > { %v345_v63 = vpop.permute.xlu1 %344  ;;  %v712_v56 = vadd.f32 %v680_v28, %v566_v32  ;;  %v713_v2 = vadd.f32 %v681_v54, %v567_v34  ;;  %v844_v30 = vadd.f32 %v812_v49, %v698_v6  ;;  %v845_v28 = vadd.f32 %v813_v61, %v699_v36 }
  0xf7   : > { %1442 = vset.pattern.permute.xlu1 %v1509_v8  ;;  %v414_v31 = vmul.f32 %v1782_v4, %v345_v63  ;;  %v415_v11 = vmul.f32 %v1784_v5, %v345_v63  ;;  %v1511_v54 = vmov 0.0   ;;  %v668_v61 = vmul.f32 %v1793_v13, %v1955_v37 }
  0xf8   : > { %944 = vperm.xlu1 %1442, %v878_v27   ;;  %v1985_v52 = vadd.f32 %v826_v62, %v712_v56  ;;  %v1987_v33 = vadd.f32 %v827_v10, %v713_v2  ;;  %1104 = vmatprep.mubr.f32.mxu0 %v1511_v54  ;;  %v669_v6 = vmul.f32 %v1795_v15, %v1955_v37 }
  0xf9   : > { %1206 = vmatprep.mubr.f32.mxu1 %v1511_v54 }
  0xfb   : > { %v466_v35 = vpop.permute.xlu1 %465 }
  0xfc   : > { %v528_v57 = vmul.f32 %v1778_v1, %v466_v35  ;;  %v529_v8 = vmul.f32 %v1780_v3, %v466_v35  ;;  %954 = vperm.xlu1 %1442, %v880_v21   ;;  %v411_v35 = vmul.f32 %v1784_v5, %v1899_v46 }
  0xfe   : > { %v1996_v14 = vadd.f32 %v528_v57, %v414_v31  ;;  %v1998_v40 = vadd.f32 %v529_v8, %v415_v11  ;;  %v524_v31 = vmul.f32 %v1778_v1, %v1909_v9  ;;  %v525_v11 = vmul.f32 %v1780_v3, %v1909_v9 }
  0xff   : > { %v670_v57 = vmul.f32 %v1793_v13, %v1964_v42  ;;  %v671_v8 = vmul.f32 %v1795_v15, %v1964_v42  ;;  %v817_v42 = vmul.f32 %v1807_v25, %v1815_v41 }
 0x100   : > { %959 = vperm.xlu1 %1442, %v881_v12   ;;  %v746_v45 = vpop.permute.xlu1 %745 }
 0x101   : > { %v814_v36 = vmul.f32 %v1805_v24, %v746_v45 }
 0x104   : > { %1037 = vperm.xlu1 %1442, %v1029_v19   ;;  %v557_v19 = vadd.f32 %v525_v11, %v411_v35 }
 0x105   : > { %v905_v16 = vpop.permute.xlu1 %904 }
 0x106   : > { %v970_v23 = vadd.f32 %v905_v16, %v1817_v47  ;;  %v971_v60 = vadd.f32 %v905_v16, %v1819_v48  ;;  %v410_v48 = vmul.f32 %v1782_v4, %v1899_v46  ;;  %v703_v29 = vadd.f32 %v671_v8, %v557_v19 }
 0x108   : > { %1132 = vperm.xlu1 %1442, %v1124_v51   ;;  %v1002_v62 = vmax.f32 %v970_v23, 0.0  ;;  %v1003_v10 = vmax.f32 %v971_v60, 0.0  ;;  %v556_v18 = vadd.f32 %v524_v31, %v410_v48  ;;  %v849_v51 = vadd.f32 %v817_v42, %v703_v29 }
 0x109   : > { %v910_v32 = vpop.permute.xlu1 %909  ;;  %v700_v60 = vadd.f32 %v668_v61, %v1895_v39 }
 0x10a   : > { %v972_v7 = vadd.f32 %v910_v32, %v844_v30  ;;  %v973_v34 = vadd.f32 %v910_v32, %v845_v28  ;;  %v702_v49 = vadd.f32 %v670_v57, %v556_v18  ;;  %v815_v30 = vmul.f32 %v1807_v25, %v746_v45 }
 0x10b   : > { %v701_v28 = vadd.f32 %v669_v6, %v1897_v43  ;;  %v977_v32 = vadd.f32 %v1957_v22, %v849_v51 }
 0x10c   : > { %v1004_v27 = vmax.f32 %v972_v7, 0.0  ;;  %v1005_v63 = vmax.f32 %v973_v34, 0.0  ;;  %v848_v16 = vadd.f32 %v816_v26, %v702_v49  ;;  %v846_v7 = vadd.f32 %v814_v36, %v700_v60 }
 0x10d   : > { %v847_v34 = vadd.f32 %v815_v30, %v701_v28 }
 0x10e   : > { %v612_v56 = vpop.permute.xlu1 %611  ;;  %v1326_v2 = vpack.c.bf16 %v1005_v63, %v1003_v10  ;;  %v1328_v21 = vpack.c.bf16 %v1004_v27, %v1002_v62  ;;  %v976_v41 = vadd.f32 %v1957_v22, %v848_v16  ;;  %v1009_v63 = vmax.f32 %v977_v32, 0.0 }
 0x10f   : > { %v674_v31 = vmul.f32 %v1793_v13, %v612_v56  ;;  %v675_v11 = vmul.f32 %v1795_v15, %v612_v56 }
 0x110   : > { %1327 = vmatprep.subr.bf16.mxu0 %v1326_v2  ;;  %v1008_v27 = vmax.f32 %v976_v41, 0.0 }
 0x111   : > { %1329 = vmatpush1.bf16.msra.mxu0 %v1328_v21 }
 0x113   : > { %v350_v47 = vpop.permute.xlu1 %349 }
 0x114   : > { %v416_v38 = vmul.f32 %v1782_v4, %v350_v47  ;;  %v417_v17 = vmul.f32 %v1784_v5, %v350_v47 }
 0x118   : > { %v470_v12 = vpop.permute.xlu1 %469 }
 0x119   : > { %v530_v53 = vmul.f32 %v1778_v1, %v470_v12  ;;  %v531_v46 = vmul.f32 %v1780_v3, %v470_v12 }
 0x11b   : > { %v2042_v20 = vadd.f32 %v530_v53, %v416_v38  ;;  %v2044_v9 = vadd.f32 %v531_v46, %v417_v17  ;;  %v706_v38 = vadd.f32 %v674_v31, %v1996_v14  ;;  %v707_v17 = vadd.f32 %v675_v11, %v1998_v40 }
 0x11c   : > { %v474_v58 = vpop.permute.xlu1 %473 }
 0x11d   : > { %v532_v40 = vmul.f32 %v1778_v1, %v474_v58  ;;  %v533_v30 = vmul.f32 %v1780_v3, %v474_v58 }
 0x121   : > { %v758_v23 = vpop.permute.xlu1 %757 }
 0x122   : > { %v820_v57 = vmul.f32 %v1805_v24, %v758_v23  ;;  %v821_v8 = vmul.f32 %v1807_v25, %v758_v23 }
 0x124   : > { %v852_v18 = vadd.f32 %v820_v57, %v706_v38  ;;  %v853_v19 = vadd.f32 %v821_v8, %v707_v17 }
 0x126   : > { %v915_v62 = vpop.permute.xlu1 %914 }
 0x127   : > { %v974_v10 = vadd.f32 %v915_v62, %v846_v7  ;;  %v975_v37 = vadd.f32 %v915_v62, %v847_v34  ;;  %v2080_v7 = vpop.permute.xlu0 %374 }
 0x129   : > { %v1006_v2 = vmax.f32 %v974_v10, 0.0  ;;  %v1007_v21 = vmax.f32 %v975_v37, 0.0  ;;  %v824_v37 = vmul.f32 %v1805_v24, %v1833_v55 }
 0x12b   : > { %v616_v47 = vpop.permute.xlu1 %615  ;;  %v1330_v45 = vpack.c.bf16 %v1009_v63, %v1007_v21  ;;  %v1332_v48 = vpack.c.bf16 %v1008_v27, %v1006_v2 }
 0x12c   : > { %v676_v58 = vmul.f32 %v1793_v13, %v616_v47  ;;  %v677_v27 = vmul.f32 %v1795_v15, %v616_v47 }
 0x12d   : > { %1331 = vmatprep.subr.bf16.mxu0 %v1330_v45 }
 0x12e   : > { %1333 = vmatpush1.bf16.msra.mxu0 %v1332_v48  ;;  %v708_v31 = vadd.f32 %v676_v58, %v2042_v20  ;;  %v709_v11 = vadd.f32 %v677_v27, %v2044_v9 }
 0x12f   : > { %v620_v39 = vpop.permute.xlu1 %619 }
 0x130   : > { %v678_v60 = vmul.f32 %v1793_v13, %v620_v39  ;;  %v679_v28 = vmul.f32 %v1795_v15, %v620_v39  ;;  %v940_v39 = vpop.permute.xlu0 %939 }
 0x134   : > { %v2060_v43 = vpop.permute.xlu1 %364 }
 0x139   : > { %v2062_v35 = vpop.permute.xlu1 %481 }
 0x13e   : > { %v762_v22 = vpop.permute.xlu1 %761 }
 0x13f   : > { %v822_v21 = vmul.f32 %v1805_v24, %v762_v22  ;;  %v823_v45 = vmul.f32 %v1807_v25, %v762_v22  ;;  %v536_v22 = vmul.f32 %v1778_v1, %v2062_v35 }
 0x143   : > { %v925_v12 = vpop.permute.xlu1 %924 }
 0x144   : > { %v978_v53 = vadd.f32 %v925_v12, %v1951_v44  ;;  %v979_v46 = vadd.f32 %v925_v12, %v1953_v50  ;;  %v418_v44 = vmul.f32 %v1782_v4, %v1948_v0  ;;  %v419_v50 = vmul.f32 %v1784_v5, %v1948_v0 }
 0x145   : > { %v825_v0 = vmul.f32 %v1807_v25, %v1833_v55  ;;  %v854_v12 = vadd.f32 %v822_v21, %v708_v31  ;;  %v855_v55 = vadd.f32 %v823_v45, %v709_v11  ;;  %v830_v21 = vmul.f32 %v1805_v24, %v1843_v59 }
 0x146   : > { %v1010_v29 = vmax.f32 %v978_v53, 0.0  ;;  %v1011_v56 = vmax.f32 %v979_v46, 0.0  ;;  %v564_v41 = vadd.f32 %v532_v40, %v418_v44  ;;  %v565_v32 = vadd.f32 %v533_v30, %v419_v50 }
 0x147   : > { %v930_v26 = vpop.permute.xlu1 %929  ;;  %v426_v45 = vmul.f32 %v1782_v4, %v2080_v7 }
 0x148   : > { %v980_v42 = vadd.f32 %v930_v26, %v852_v18  ;;  %v981_v49 = vadd.f32 %v930_v26, %v853_v19  ;;  %v710_v62 = vadd.f32 %v678_v60, %v564_v41  ;;  %v711_v10 = vadd.f32 %v679_v28, %v565_v32 }
 0x149   : > { %v537_v26 = vmul.f32 %v1780_v3, %v2062_v35 }
 0x14a   : > { %v1012_v61 = vmax.f32 %v980_v42, 0.0  ;;  %v1013_v6 = vmax.f32 %v981_v49, 0.0  ;;  %v856_v63 = vadd.f32 %v824_v37, %v710_v62  ;;  %v857_v2 = vadd.f32 %v825_v0, %v711_v10  ;;  %v950_v37 = vpop.permute.xlu0 %949 }
 0x14b   : > { %v422_v49 = vmul.f32 %v1782_v4, %v2060_v43 }
 0x14c   : > { %v628_v16 = vpop.permute.xlu1 %627  ;;  %v1334_v51 = vpack.c.bf16 %v1013_v6, %v1011_v56  ;;  %v1336_v36 = vpack.c.bf16 %v1012_v61, %v1010_v29  ;;  %v984_v57 = vadd.f32 %v940_v39, %v856_v63  ;;  %v985_v8 = vadd.f32 %v940_v39, %v857_v2 }
 0x14d   : > { %v423_v29 = vmul.f32 %v1784_v5, %v2060_v43  ;;  %v682_v56 = vmul.f32 %v1793_v13, %v628_v16  ;;  %v683_v61 = vmul.f32 %v1795_v15, %v628_v16  ;;  %v568_v6 = vadd.f32 %v536_v22, %v422_v49 }
 0x14e   : > { %1335 = vmatprep.subr.bf16.mxu0 %v1334_v51  ;;  %v1016_v47 = vmax.f32 %v984_v57, 0.0  ;;  %v1017_v46 = vmax.f32 %v985_v8, 0.0 }
 0x14f   : > { %1337 = vmatpush1.bf16.msra.mxu0 %v1336_v36  ;;  %v569_v51 = vadd.f32 %v537_v26, %v423_v29  ;;  %v714_v50 = vadd.f32 %v682_v56, %v568_v6  ;;  %v1027_v6 = vld [vmem:[%s2193_s3 + $0x8] sm:$0xff] }
 0x151   : > { %v370_v14 = vpop.permute.xlu1 %369  ;;  %v715_v40 = vadd.f32 %v683_v61, %v569_v51  ;;  %v1026_v61 = vld [vmem:[%s2193_s3] sm:$0xff] }
 0x152   : > { %v424_v41 = vmul.f32 %v1782_v4, %v370_v14  ;;  %v425_v16 = vmul.f32 %v1784_v5, %v370_v14  ;;  %v831_v14 = vmul.f32 %v1807_v25, %v1843_v59 }
 0x156   : > { %v486_v23 = vpop.permute.xlu1 %485 }
 0x157   : > { %v538_v30 = vmul.f32 %v1778_v1, %v486_v23  ;;  %v539_v60 = vmul.f32 %v1780_v3, %v486_v23 }
 0x159   : > { %v570_v0 = vadd.f32 %v538_v30, %v424_v41  ;;  %v571_v58 = vadd.f32 %v539_v60, %v425_v16 }
 0x15a   : > { %v490_v34 = vpop.permute.xlu1 %489 }
 0x15b   : > { %v540_v27 = vmul.f32 %v1778_v1, %v490_v34  ;;  %v541_v63 = vmul.f32 %v1780_v3, %v490_v34 }
 0x15d   : > { %v572_v8 = vadd.f32 %v540_v27, %v426_v45 }
 0x15f   : > { %v774_v48 = vpop.permute.xlu1 %773 }
 0x160   : > { %v828_v36 = vmul.f32 %v1805_v24, %v774_v48  ;;  %v829_v35 = vmul.f32 %v1807_v25, %v774_v48  ;;  %v427_v48 = vmul.f32 %v1784_v5, %v2080_v7 }
 0x162   : > { %v860_v43 = vadd.f32 %v828_v36, %v714_v50  ;;  %v861_v28 = vadd.f32 %v829_v35, %v715_v40  ;;  %v1033_v35 = vpop.permute.xlu0 %1032 }
 0x164   : > { %v935_v38 = vpop.permute.xlu1 %934  ;;  %v988_v2 = vadd.f32 %v950_v37, %v860_v43  ;;  %v989_v23 = vadd.f32 %v950_v37, %v861_v28 }
 0x165   : > { %v982_v17 = vadd.f32 %v935_v38, %v854_v12  ;;  %v983_v53 = vadd.f32 %v935_v38, %v855_v55  ;;  %v573_v12 = vadd.f32 %v541_v63, %v427_v48 }
 0x166   : > { %v1021_v59 = vmax.f32 %v989_v23, 0.0  ;;  %v1020_v55 = vmax.f32 %v988_v2, 0.0  ;;  %v1128_v27 = vpop.permute.xlu0 %1127 }
 0x167   : > { %v1014_v18 = vmax.f32 %v982_v17, 0.0  ;;  %v1015_v19 = vmax.f32 %v983_v53, 0.0 }
 0x169   : > { %v632_v20 = vpop.permute.xlu1 %631  ;;  %v1338_v42 = vpack.c.bf16 %v1017_v46, %v1015_v19  ;;  %v1340_v9 = vpack.c.bf16 %v1016_v47, %v1014_v18 }
 0x16a   : > { %v684_v62 = vmul.f32 %v1793_v13, %v632_v20  ;;  %v685_v10 = vmul.f32 %v1795_v15, %v632_v20 }
 0x16b   : > { %1339 = vmatprep.subr.bf16.mxu0 %v1338_v42 }
 0x16c   : > { %1341 = vmatpush1.bf16.msra.mxu0 %v1340_v9  ;;  %v716_v39 = vadd.f32 %v684_v62, %v570_v0  ;;  %v717_v31 = vadd.f32 %v685_v10, %v571_v58  ;;  %v1121_v0 = vld [vmem:[%s2195_s5] sm:$0xff]  ;;  %v1122_v58 = vld [vmem:[%s2195_s5 + $0x8] sm:$0xff] }
 0x16d   : > { %v636_v44 = vpop.permute.xlu1 %635 }
 0x16e   : > { %v686_v1 = vmul.f32 %v1793_v13, %v636_v44  ;;  %v687_v3 = vmul.f32 %v1795_v15, %v636_v44  ;;  %v862_v53 = vadd.f32 %v830_v21, %v716_v39  ;;  %v863_v47 = vadd.f32 %v831_v14, %v717_v31 }
 0x170   : > { %v718_v13 = vadd.f32 %v686_v1, %v572_v8  ;;  %v719_v46 = vadd.f32 %v687_v3, %v573_v12 }
 0x172   : > { %v782_v32 = vpop.permute.xlu1 %781 }
 0x173   : > { %v832_v4 = vmul.f32 %v1805_v24, %v782_v32  ;;  %v833_v38 = vmul.f32 %v1807_v25, %v782_v32 }
 0x175   : > { %v865_v22 = vadd.f32 %v833_v38, %v719_v46 }
 0x177   : > { %v945_v11 = vpop.permute.xlu1 %944 }
 0x178   : > { %v986_v34 = vadd.f32 %v945_v11, %v1985_v52  ;;  %v987_v57 = vadd.f32 %v945_v11, %v1987_v33  ;;  %v864_v33 = vadd.f32 %v832_v4, %v718_v13 }
 0x17a   : > { %v1018_v5 = vmax.f32 %v986_v34, 0.0  ;;  %v1019_v7 = vmax.f32 %v987_v57, 0.0 }
 0x17b   : > { %v955_v17 = vpop.permute.xlu1 %954 }
 0x17c   : > { %v1342_v15 = vpack.c.bf16 %v1021_v59, %v1019_v7  ;;  %v1344_v18 = vpack.c.bf16 %v1020_v55, %v1018_v5  ;;  %v990_v52 = vadd.f32 %v955_v17, %v862_v53  ;;  %v991_v19 = vadd.f32 %v955_v17, %v863_v47 }
 0x17e   : > { %1343 = vmatprep.subr.bf16.mxu0 %v1342_v15  ;;  %v1022_v42 = vmax.f32 %v990_v52, 0.0  ;;  %v1023_v25 = vmax.f32 %v991_v19, 0.0 }
 0x17f   : > { %v960_v26 = vpop.permute.xlu1 %959  ;;  %1345 = vmatpush1.bf16.msra.mxu0 %v1344_v18 }
 0x180   : > { %v992_v20 = vadd.f32 %v960_v26, %v864_v33  ;;  %v993_v24 = vadd.f32 %v960_v26, %v865_v22 }
 0x182   : > { %v1024_v9 = vmax.f32 %v992_v20, 0.0  ;;  %v1025_v49 = vmax.f32 %v993_v24, 0.0 }
 0x183   : > { %v1038_v50 = vpop.permute.xlu1 %1037 }
 0x184   : > { %v1346_v29 = vpack.c.bf16 %v1025_v49, %v1023_v25  ;;  %v1348_v56 = vpack.c.bf16 %v1024_v9, %v1022_v42 }
 0x186   : > { %1347 = vmatprep.subr.bf16.mxu0 %v1346_v29 }
 0x187   : > { %1349 = vmatpush1.bf16.msra.mxu0 %v1348_v56  ;;  %v1133_v45 = vpop.permute.xlu1 %1132 }
 0x18a   : > { %1105 = vmatmul.mubr.f32.vlgmr.msra.gmra.mrb[0].mxu0 %v1026_v61 }
 0x18b   : > { %1110 = vmatprep.mubr.f32.mxu0 %v1511_v54 }
 0x18e   : > { %1111 = vmatmul.mubr.f32.gmra.mrb[2].mxu0 %v1027_v6 }
 0x25d   : > { %v1106_v51 = vpop.f32.mrb[0].mxu0 }
 0x25e   : > { %v1108_v36 = vpop.f32.mrb[1].mxu0  ;;  %v1107_v44 = vadd.f32 %v1106_v51, %v1033_v35 }
 0x25f   : > { %v1109_v40 = vadd.f32 %v1108_v36, %v1033_v35 }
 0x260   : > { %v1117_v41 = vmax.f32 %v1107_v44, 0.0 }
 0x261   : > { %v1112_v30 = vpop.f32.mrb[2].mxu0  ;;  %v1118_v32 = vmax.f32 %v1109_v40, 0.0 }
 0x262   : > { %v1113_v60 = vadd.f32 %v1112_v30, %v1038_v50  ;;  %v1114_v43 = vpop.f32.mrb[3].mxu0 }
 0x263   : > { %v1115_v28 = vadd.f32 %v1114_v43, %v1038_v50 }
 0x264   : > { %v1119_v16 = vmax.f32 %v1113_v60, 0.0 }
 0x265   : > { %v1120_v62 = vmax.f32 %v1115_v28, 0.0 }
 0x266   : > { %v1352_v10 = vpack.c.bf16 %v1119_v16, %v1117_v41 }
 0x267   : > { %v1350_v37 = vpack.c.bf16 %v1120_v62, %v1118_v32 }
 0x269   : > { %1351 = vmatprep.subr.bf16.mxu1 %v1350_v37 }
 0x26a   : > { %1353 = vmatpush1.bf16.msra.mxu1 %v1352_v10 }
 0x26d   : > { %1310 = vmatmul.mubr.msk.f32.vlgmr.msra.gmra.mrb[0].mxu1 %vm1135_vm0, %v1121_v0 }
 0x26e   : > { %1212 = vmatprep.mubr.f32.mxu1 %v1511_v54 }
 0x271   : > { %1311 = vmatmul.mubr.msk.f32.gmra.mrb[2].mxu1 %vm1135_vm0, %v1122_v58 }
 0x340   : > { %v1208_v63 = vpop.f32.mrb[0].mxu1 }
 0x341   : > { %v1209_v2 = vadd.f32 %v1208_v63, %v1128_v27  ;;  %v1210_v23 = vpop.f32.mrb[1].mxu1 }
 0x342   : > { %v1211_v21 = vadd.f32 %v1210_v23, %v1128_v27 }
 0x343   : > { %v1219_v14 = vmax.f32 %v1209_v2, 0.0 }
 0x344   : > { %v1220_v48 = vmax.f32 %v1211_v21, 0.0  ;;  %v1214_v39 = vpop.f32.mrb[2].mxu1 }
 0x345   : > { %1223 = vst [vmem:[%s272_s16] sm:$0xff] %v1219_v14  ;;  %v1215_v54 = vadd.f32 %v1214_v39, %v1133_v45  ;;  %v1216_v31 = vpop.f32.mrb[3].mxu1 }
 0x346   : > { %1224 = vst [vmem:[%s272_s16 + $0x8] sm:$0xff] %v1220_v48  ;;  %v1217_v11 = vadd.f32 %v1216_v31, %v1133_v45 }
 0x347   : > { %v1221_v1 = vmax.f32 %v1215_v54, 0.0 }
 0x348   : > { %v1222_v3 = vmax.f32 %v1217_v11, 0.0 }
 0x349   : > { %1225 = vst [vmem:[%s272_s16 + $0x10] sm:$0xff] %v1221_v1 }
 0x34a   : > { %1226 = vst [vmem:[%s272_s16 + $0x18] sm:$0xff] %v1222_v3 }
 0x34b   : > { %1456 = shalt.err (!%p1453_p3)
}
 0x34c   : > { %s1457_s9 = scalar_lea.hbm %s2147_s21, 512  ;;  %s1461_s15 = scalar_lea.hbm %s2197_s7, 2048 }
 0x34d   : > { %p1458_p4 = scmp.ne.s32.totalorder %s2147_s21, %s1457_s9  ;;  %p1462_p9 = scmp.lt.u32.totalorder %s2147_s21, %s2197_s7 }
 0x34e   : > { %p1463_p10 = scmp.lt.u32.totalorder %s1461_s15, %s1457_s9  ;;  %p1465_p12 = scmp.lt.u32.totalorder %s1457_s9, %s2147_s21 }
 0x34f   : > { %p1459_p7 = pnand %p1458_p4, %p1594_p5 }
 0x350   : > { %p1464_p11 = por %p1463_p10, %p1462_p9 }
 0x351   : > { %p1460_p8 = pneg %p1459_p7 }
 0x352   : > { %p1466_p13 = por %p1465_p12, %p1464_p11 }
 0x354   : > { %p1467_p0 = pnand %p1466_p13, %p1460_p8 }
 0x356   : > { %1470 = shalt.err (!%p1467_p0)
}
 0x357   : > { %s1513_s19 = smov 256   ;;  %s1514_s20 = smov 1024  }
 0x358   : > { %s1515_s22 = smov 16  }
 0x359   : > { %1354 = dma.vmem_to_hbm [thread:$0]  (%p1594_p5), %s2142_s17, 512, %s2147_s21, %s2149_s28, %s1513_s19, %s1514_s20, %s1515_s22  }
 0x35a PF: > { %p1360_p1 = scmp.ge.s32.totalorder %s1505_s27, 2  ;;  %s1256_s23 = sand.u32 1, %s1493_s24  }
 0x35b   : > { %s1257_s29 = scalar_lea.sflag [#allocation3], %s1256_s23 }
 0x35c   : > { %p1357_p2 = pnand %p1360_p1, %p1598_p6 }
 0x35e   : > { %1488 = dma.done.wait (!%p1357_p2), %s1257_s29, 512  }
 0x35f   : > { %1490 = vsyncadd (!%p1357_p2), %s1257_s29, 4294966784  ;;  %p17_p3 = scmp.ge.s32.totalorder %s1581_s30, 6   ;;  %s2200_s24 = smov %s1497_s25 }
 0x360   : > { %s2201_s25 = smov %s1501_s26  ;;  %s2202_s26 = smov %s1592_s10 }
 0x361   : > { %s2203_s27 = smov %s1581_s30  ;;  %19 = sbr.rel (!%p17_p3) target bundleno = 3 (0x3), region = 83 }
 0x368   :  { %1262 = vsyncpa [#allocation3], 1 }
 0x369   :  { %1264 = vsyncpa [#allocation3 + $0x1], 1 }

</bundles_post_ra>
